<compile_context>
chip_gen: v7x
topology: tpu7x:2x2x1
jax: 0.10.0
libtpu: 0.0.40
codegen_flags: <defaults>
</compile_context>

<pallas_src>
import math

import jax
import jax.numpy as jnp
from jax.experimental import pallas as pl
from jax.experimental.pallas import tpu as pltpu


def _eca_kernel_size(channels: int, gamma: int = 2, beta: int = 1) -> int:
    """Mirrors the PyTorch __init__ kernel-size computation."""
    k = int(abs(math.log(channels, 2) + beta) / gamma)
    k = max(k if k % 2 else k + 1, 3)
    return k


def _roll_lanes(y: jax.Array, shift: int) -> jax.Array:
    """Circular roll along the last (lane) axis by a STATIC shift.

    Implemented as two static lane slices + a concatenate (guaranteed-lowerable
    form of the rotation); the operand is only the tiny (TB, C) mean vector so
    the cost is O(TB*C) either way.
    """
    C = y.shape[-1]
    s = shift % C
    if s == 0:
        return y
    return jnp.concatenate([y[..., C - s:], y[..., :C - s]], axis=-1)


def _make_cca_kernel(C: int, k: int, pad: int, inv_hw: float):
    """Kernel closure over the static channel / conv-kernel geometry."""

    def kernel(w_ref, x_ref, o_ref):
        # w_ref: (k,)         circular Conv1d weights, f32, in SMEM
        # x_ref: (TB, C, HW)  batch tile of the input (native dtype)
        # o_ref: (TB, C, HW)  gated output tile (native dtype)

        # Per-channel means, accumulated in f32 directly off the ref read
        # (no persistent f32 copy of the tile in VMEM).
        y = jnp.sum(x_ref[...], axis=2, dtype=jnp.float32) * inv_hw    # (TB, C)

        # Circular 1-D conv over the channel axis:
        #   conv[b, c] = sum_j w[j] * y[b, (c + j - pad) mod C]
        # done as k shifted multiply-adds on the tiny mean vector (no circulant,
        # no MXU on this serialized critical path).
        conv = jnp.zeros_like(y)
        for j in range(k):                                             # k tiny & static
            conv = conv + _roll_lanes(y, pad - j) * w_ref[j]

        g = jax.nn.sigmoid(conv)                                       # (TB, C) gate, f32

        # Gate in the native dtype; the tile is re-read from the ref so the
        # multiply runs natively (bf16 on v6e/v7x) with no f32 tile copy.
        o_ref[...] = x_ref[...] * g.astype(o_ref.dtype)[:, :, None]

    return kernel


def _vmem_capacity_bytes() -> int:
    try:
        return int(pltpu.get_tpu_info().vmem_capacity_bytes)
    except Exception:
        return 64 * 1024 * 1024   # conservative default (v7x physical VMEM)


def _pick_batch_tile(B: int, per_batch_bytes: int, vmem_cap_bytes: int) -> int:
    """Largest divisor of B that (a) keeps the double-buffered in+out working
    set (2x in + 2x out tiles) under ~40% of physical VMEM and (b) leaves
    >= 2-4 grid steps so DMA/compute pipelining and v7x megacore engage."""
    budget = int(0.4 * vmem_cap_bytes)                        # headroom for scratch
    tb_vmem = max(1, budget // max(1, 4 * per_batch_bytes))
    min_steps = min(B, 4) if B > 1 else 1
    tb_steps = max(1, B // min_steps)
    tb = max(1, min(B, tb_vmem, tb_steps))
    while B % tb:
        tb -= 1
    return tb


def circular_channel_attention_2d(x: jax.Array, conv_weight: jax.Array) -> jax.Array:
    B, C, H, W = x.shape
    k = int(conv_weight.shape[0])
    pad = (k - 1) // 2
    if pad >= C:
        # PyTorch F.pad(mode='circular') also requires padding < size.
        raise ValueError(f"circular padding {pad} must be < channels {C}")
    HW = H * W

    # (B, C, H*W): free (bitcast-compatible) reshape; spatial on the lane axis.
    x_flat = x.reshape(B, C, HW)

    itemsize = jnp.dtype(x.dtype).itemsize
    per_batch_bytes = C * HW * itemsize
    vmem_cap = _vmem_capacity_bytes()
    TB = _pick_batch_tile(B, per_batch_bytes, vmem_cap)
    num_steps = B // TB
    # TODO(synk): if a single (1, C, H*W) slab exceeds the VMEM budget, switch to
    # a two-pass HW-tiled variant (pass 1: stream HW chunks accumulating per-channel
    # f32 sums; pass 2: stream again, gate and store).

    tile_bytes = TB * per_batch_bytes
    n_buffers = 4 if num_steps > 1 else 2     # double-buffered only when pipelining
    vmem_limit = int(min(vmem_cap, max(32 << 20, n_buffers * tile_bytes + (16 << 20))))

    cost = pl.CostEstimate(
        flops=int(2 * B * C * HW + 2 * B * C * k),
        transcendentals=int(B * C),
        bytes_accessed=int(2 * B * C * HW * itemsize + k * 4),
    )

    spec_kwargs = {}
    if num_steps == 1:
        # No pipeline rotation possible: don't pay 2x VMEM for idle buffers.
        spec_kwargs = dict(pipeline_mode=pl.Buffered(1))
    x_spec = pl.BlockSpec((TB, C, HW), lambda b: (b, 0, 0), **spec_kwargs)
    o_spec = pl.BlockSpec((TB, C, HW), lambda b: (b, 0, 0), **spec_kwargs)

    kernel = _make_cca_kernel(C, k, pad, 1.0 / float(HW))

    out = pl.pallas_call(
        kernel,
        out_shape=jax.ShapeDtypeStruct((B, C, HW), x.dtype),
        grid_spec=pltpu.PrefetchScalarGridSpec(
            num_scalar_prefetch=0,
            grid=(num_steps,),
            in_specs=[
                pl.BlockSpec(memory_space=pltpu.MemorySpace.SMEM),   # conv weights (k,)
                x_spec,                                              # x batch tile
            ],
            out_specs=o_spec,
        ),
        compiler_params=pltpu.CompilerParams(
            dimension_semantics=("parallel",),
            vmem_limit_bytes=vmem_limit,
        ),
        cost_estimate=cost,
    )(conv_weight.astype(jnp.float32), x_flat)

    return out.reshape(B, C, H, W)


if __name__ == "__main__":
    key = jax.random.PRNGKey(0)
    kx, kw = jax.random.split(key)

    B, C, H, W = 2, 4, 16, 16
    x = jax.random.normal(kx, (B, C, H, W), dtype=jnp.float32)

    # Conv1d(1, 1, kernel_size, bias=False) weight, deterministic init
    # (PyTorch default is U(-1/sqrt(fan_in), 1/sqrt(fan_in)), fan_in = kernel_size).
    k_size = _eca_kernel_size(C, gamma=2, beta=1)          # -> 3 for C=4
    padding = (k_size - 1) // 2
    bound = 1.0 / math.sqrt(k_size)
    conv_w = jax.random.uniform(kw, (k_size,), jnp.float32, -bound, bound)

    out = jax.block_until_ready(circular_channel_attention_2d(x, conv_w))

    # Pure-JAX reference of the PyTorch forward for verification.
    y = x.mean((2, 3))                                                     # (B, C)
    y_pad = jnp.concatenate([y[:, -padding:], y, y[:, :padding]], axis=1)  # circular pad
    conv = sum(conv_w[j] * y_pad[:, j:j + C] for j in range(k_size))       # (B, C)
    ref = x * jax.nn.sigmoid(conv)[:, :, None, None]

    assert out.shape == (B, C, H, W) and out.dtype == x.dtype
    assert jnp.allclose(out, ref, atol=1e-5, rtol=1e-5), float(jnp.max(jnp.abs(out - ref)))
    print("KERNEL_OK")
</pallas_src>

<mosaic_0001>
module attributes {stable_mosaic.version = 11 : i64} {
  func.func @kernel(%arg0: i32, %arg1: memref<3xf32, #tpu.memory_space<smem>>, %arg2: memref<1x4x256xf32, #tpu.memory_space<vmem>>, %arg3: memref<1x4x256xf32, #tpu.memory_space<vmem>>) attributes {dimension_semantics = [#tpu.dimension_semantics<parallel>], iteration_bounds = array<i64: 2>, scalar_prefetch = 0 : i64, scratch_operands = 0 : i64, tpu.core_type = #tpu.core_type<tc>, window_params = [{transform_indices = @transform_0, window_bounds = array<i64: 3>}, {transform_indices = @transform_1, window_bounds = array<i64: 1, 4, 256>}, {transform_indices = @transform_2, window_bounds = array<i64: 1, 4, 256>}]} {
    %c0 = arith.constant 0 : index
    %c0_0 = arith.constant 0 : index
    %c0_1 = arith.constant 0 : index
    %0 = vector.load %arg2[%c0, %c0_0, %c0_1] : memref<1x4x256xf32, #tpu.memory_space<vmem>>, vector<1x4x256xf32>
    %cst = arith.constant dense<0.000000e+00> : vector<1x4xf32>
    %1 = vector.multi_reduction <add>, %0, %cst [2] : vector<1x4x256xf32> to vector<1x4xf32>
    %cst_2 = arith.constant 3.906250e-03 : f32
    %2 = vector.broadcast %cst_2 : f32 to vector<1x4xf32>
    %3 = arith.mulf %1, %2 : vector<1x4xf32>
    %cst_3 = arith.constant 0.000000e+00 : f32
    %4 = vector.broadcast %cst_3 : f32 to vector<1x4xf32>
    %5 = vector.extract_strided_slice %3 {offsets = [0, 3], sizes = [1, 1], strides = [1, 1]} : vector<1x4xf32> to vector<1x1xf32>
    %6 = vector.extract_strided_slice %3 {offsets = [0, 0], sizes = [1, 3], strides = [1, 1]} : vector<1x4xf32> to vector<1x3xf32>
    %7 = tpu.concatenate %5, %6 in 1 : vector<1x1xf32>, vector<1x3xf32> -> vector<1x4xf32>
    %c0_4 = arith.constant 0 : index
    %8 = memref.load %arg1[%c0_4] : memref<3xf32, #tpu.memory_space<smem>>
    %9 = vector.broadcast %8 : f32 to vector<1x4xf32>
    %10 = arith.mulf %7, %9 : vector<1x4xf32>
    %11 = arith.addf %4, %10 : vector<1x4xf32>
    %c1 = arith.constant 1 : index
    %12 = memref.load %arg1[%c1] : memref<3xf32, #tpu.memory_space<smem>>
    %13 = vector.broadcast %12 : f32 to vector<1x4xf32>
    %14 = arith.mulf %3, %13 : vector<1x4xf32>
    %15 = arith.addf %11, %14 : vector<1x4xf32>
    %16 = vector.extract_strided_slice %3 {offsets = [0, 1], sizes = [1, 3], strides = [1, 1]} : vector<1x4xf32> to vector<1x3xf32>
    %17 = vector.extract_strided_slice %3 {offsets = [0, 0], sizes = [1, 1], strides = [1, 1]} : vector<1x4xf32> to vector<1x1xf32>
    %18 = tpu.concatenate %16, %17 in 1 : vector<1x3xf32>, vector<1x1xf32> -> vector<1x4xf32>
    %c2 = arith.constant 2 : index
    %19 = memref.load %arg1[%c2] : memref<3xf32, #tpu.memory_space<smem>>
    %20 = vector.broadcast %19 : f32 to vector<1x4xf32>
    %21 = arith.mulf %18, %20 : vector<1x4xf32>
    %22 = arith.addf %15, %21 : vector<1x4xf32>
    %23 = arith.negf %22 : vector<1x4xf32>
    %24 = math.exp %23 : vector<1x4xf32>
    %cst_5 = arith.constant 1.000000e+00 : f32
    %25 = vector.broadcast %cst_5 : f32 to vector<1x4xf32>
    %26 = arith.addf %25, %24 : vector<1x4xf32>
    %27 = arith.divf %25, %26 : vector<1x4xf32>
    %c0_6 = arith.constant 0 : index
    %c0_7 = arith.constant 0 : index
    %c0_8 = arith.constant 0 : index
    %28 = vector.load %arg2[%c0_6, %c0_7, %c0_8] : memref<1x4x256xf32, #tpu.memory_space<vmem>>, vector<1x4x256xf32>
    %29 = vector.shape_cast %27 : vector<1x4xf32> to vector<1x4x1xf32>
    %30 = vector.broadcast %29 : vector<1x4x1xf32> to vector<1x4x256xf32>
    %31 = arith.mulf %28, %30 : vector<1x4x256xf32>
    %c0_9 = arith.constant 0 : index
    %c0_10 = arith.constant 0 : index
    %c0_11 = arith.constant 0 : index
    %32 = vector.load %arg3[%c0_9, %c0_10, %c0_11] : memref<1x4x256xf32, #tpu.memory_space<vmem>>, vector<1x4x256xf32>
    tpu.vector_store %arg3[%c0_9, %c0_10, %c0_11], %31 {strides = array<i32>} : memref<1x4x256xf32, #tpu.memory_space<vmem>>, vector<1x4x256xf32>,
    return
  }
  func.func @transform_0(%arg0: i32) -> i32 {
    %c0_i32 = arith.constant 0 : i32
    %c0_i32_0 = arith.constant 0 : i32
    return %c0_i32 : i32
  }
  func.func @transform_1(%arg0: i32) -> (i32, i32, i32) {
    %c0_i32 = arith.constant 0 : i32
    %c0_i32_0 = arith.constant 0 : i32
    %c0_i32_1 = arith.constant 0 : i32
    return %arg0, %c0_i32, %c0_i32_0 : i32, i32, i32
  }
  func.func @transform_2(%arg0: i32) -> (i32, i32, i32) {
    %c0_i32 = arith.constant 0 : i32
    %c0_i32_0 = arith.constant 0 : i32
    %c0_i32_1 = arith.constant 0 : i32
    return %arg0, %c0_i32, %c0_i32_0 : i32, i32, i32
  }
}

</mosaic_0001>

<bundles_post_ra>
// kernel: tpu_custom_call.1
= control target key start
LH: loop header
LB: loop body
LE: loop exit
PB: predicated region body
PF: predicated region fallthrough
CT: control target
= control target key end

     0   :  { %7 = vsyncpa [#allocation5], 0  ;;  %s773_s0 = inlined_call_operand.hbm [shape: f32[3], index: 0, kind: input, shape index: {}]   ;;  %s774_s1 = inlined_call_operand.hbm [shape: f32[2,4,256], index: 1, kind: input, shape index: {}]   ;;  %s775_s2 = inlined_call_operand.hbm [shape: f32[2,4,256], index: 2, kind: output, shape index: {}]  }
   0x1   :  { %8 = vsyncpa [#allocation3], 0 }
   0x2   :  { %10 = vsyncpa [#allocation3 + $0x1], 0 }
   0x3   :  { %11 = vsyncpa [#allocation4], 0 }
   0x4   :  { %13 = vsyncpa [#allocation4 + $0x1], 0  ;;  %s564_s9 = smov 0   ;;  %s566_s10 = smov 0  }
   0x5   :  { %s568_s11 = smov 0   ;;  %s570_s12 = smov 0  }
   0x6 LB: > { %s585_s13 = sadd.s32 4294967295, %s543_s12   ;;  %s346_s14 = sadd.s32 4294967294, %s543_s12   ;;  %s543_s12 = sphi %s570_s12, %s796_s12   ;;  %s539_s11 = sphi %s568_s11, %s795_s11   ;;  %s535_s10 = sphi %s566_s10, %s794_s10   ;;  %s531_s9 = sphi %s564_s9, %s793_s9  }
   0x7   : > { %p60_p0 = scmp.ne.s32.totalorder %s535_s10, %s531_s9  ;;  %p776_p1 = scmp.eq.s32.totalorder %s585_s13, 0 }
   0x8   : > { %p90_p3 = scmp.eq.s32.totalorder %s346_s14, 1  ;;  %p347_p5 = scmp.ge.s32.totalorder %s543_s12, 1 }
   0x9   : > { %p594_p4 = por %p776_p1, %p60_p0  ;;  %p97_p7 = scmp.lt.s32.totalorder %s543_s12, 3 }
   0xa   : > { %p599_p6 = por %p90_p3, %p60_p0  ;;  %s610_s18 = sadd.s32 1, %s543_s12  }
   0xb   : > { %s779_s15 = scalar_select %p594_p4, 1, 0 }
   0xc   : > { %s780_s16 = scalar_select %p599_p6, 1, 0 }
   0xd   : > { %p604_p8 = pnand %p347_p5, %p97_p7  ;;  %s44_s19 = ssub.s32 %s543_s12, %s610_s18 }
   0xe   : > { %s47_s20 = sadd.s32 1, %s539_s11  ;;  %p623_p12 = scmp.eq.s32.totalorder %s44_s19, 0 }
   0xf   : > { %p375_p10 = pneg %p604_p8  ;;  %p54_p13 = scmp.ne.s32.totalorder %s539_s11, %s535_s10 }
  0x10   : > { %p55_p0 = scmp.eq.s32.totalorder %s543_s12, 0  ;;  %p388_p3 = scmp.lt.s32.totalorder %s543_s12, 2 }
  0x11   : > { %p619_p11 = pnand %p375_p10, %p776_p1  ;;  %s430_s25 = scalar_lea.hbm %s773_s0, 16 }
  0x12   : > { %p431_p5 = scmp.ne.s32.totalorder %s773_s0, %s430_s25  ;;  %p437_p1 = scmp.lt.u32.totalorder %s430_s25, %s773_s0 }
  0x13   : > { %p432_p7 = pneg %p619_p11 }
  0x15   : > { %p433_p10 = pnand %p432_p7, %p431_p5 }
  0x17   : > { %p434_p9 = pneg %p433_p10 }
  0x19   : > { %p439_p2 = pnand %p437_p1, %p434_p9 }
  0x1b   : > { %442 = shalt.err (!%p439_p2)
}
  0x1c   : > { %s545_s30 = smov [#allocation2]   ;;  %p56_p1 = por %p55_p0, %p54_p13 }
  0x1d   : > { %378 = dma.hbm_to_smem (!%p619_p11), %s773_s0, 16, %s545_s30, [#allocation5]  }
  0x1e   : > { %s650_s5 = scalar_select %p623_p12, %s539_s11, %s47_s20  }
  0x1f   : > { %p784_p2 = scmp.eq.s32.totalorder %s585_s13, 1  ;;  %s119_s7 = sand.u32 1, %s539_s11  }
  0x20   : > { %s365_s8 = sshll.u32 %s543_s12, 7  ;;  %s350_s14 = sshll.u32 %s119_s7, 3 }
  0x21   : > { %p662_p9 = por %p784_p2, %p54_p13  ;;  %s671_s23 = scalar_lea.hbm %s774_s1, %s365_s8 }
  0x22   : > { %s123_s20 = scalar_lea.vmem [#allocation6], %s350_s14  ;;  %p675_p11 = pnand %p388_p3, %p56_p1 }
  0x23   : > { %s785_s6 = scalar_select %p662_p9, 1, 0 }
  0x24   : > { %s131_s22 = sshll.u32 %s123_s20, 4  ;;  %s120_s25 = scalar_lea.sflag [#allocation3], %s119_s7  ;;  %s679_s22 = int_to_ptr.vmem [resolvable:$true] %s131_s22 }
  0x25   : > { %s443_s26 = scalar_lea.hbm %s671_s23, 128  ;;  %p445_p13 = pneg %p675_p11 }
  0x26   : > { %p444_p12 = scmp.ne.s32.totalorder %s671_s23, %s443_s26  ;;  %s448_s29 = scalar_lea.hbm %s774_s1, 256 }
  0x27   : > { %p449_p3 = scmp.lt.u32.totalorder %s671_s23, %s774_s1  ;;  %p450_p7 = scmp.lt.u32.totalorder %s448_s29, %s443_s26 }
  0x28   : > { %p446_p0 = pnand %p445_p13, %p444_p12  ;;  %p452_p1 = scmp.lt.u32.totalorder %s443_s26, %s671_s23 }
  0x29   : > { %p451_p10 = por %p450_p7, %p449_p3 }
  0x2a   : > { %p447_p5 = pneg %p446_p0 }
  0x2b   : > { %p453_p2 = por %p452_p1, %p451_p10 }
  0x2d   : > { %p454_p6 = pnand %p453_p2, %p447_p5 }
  0x2f   : > { %457 = shalt.err (!%p454_p6)
}
  0x30   : > { %s458_s4 = scalar_lea.vmem %s679_s22, 128  ;;  %s546_s7 = smov [#allocation6]  }
  0x31   : > { %p459_p12 = scmp.ne.s32.totalorder %s679_s22, %s458_s4  ;;  %s463_s8 = sshll.u32 %s546_s7, 4  ;;  %s464_s8 = int_to_ptr.vmem [resolvable:$false] %s463_s8 }
  0x32   : > { %s465_s14 = scalar_lea.vmem %s464_s8, 256  ;;  %p466_p4 = scmp.lt.s32.totalorder %s679_s22, %s464_s8 }
  0x33   : > { %p461_p0 = pnand %p459_p12, %p445_p13  ;;  %p467_p3 = scmp.lt.s32.totalorder %s465_s14, %s458_s4 }
  0x35   : > { %p462_p9 = pneg %p461_p0  ;;  %p468_p7 = por %p467_p3, %p466_p4 }
  0x37   : > { %p469_p10 = pnand %p468_p7, %p462_p9 }
  0x39   : > { %472 = shalt.err (!%p469_p10)
}
  0x3a   : > { %382 = dma.hbm_to_vmem [thread:$0]  (!%p675_p11), %s671_s23, 128, %s679_s22, %s120_s25  }
  0x3b   : > { %140 = sbr.rel (%p604_p8) target bundleno = 393 (0x189), region = 28  ;;  %p787_p6 = scmp.eq.s32.totalorder (!%p604_p8), %s585_s13, 0 }
  0x42   : > { %518 = dma.done.wait (%p787_p6), [#allocation5], 16   ;;  %p788_p13 = pmov %p787_p6 }
  0x43   : > { %s713_s19 = sand.u32 1, %s535_s10   ;;  %p789_p4 = scmp.ne.s32.totalorder %s779_s15, 0 }
  0x44   : > { %520 = vsyncadd (%p788_p13), [#allocation5], 4294967280  ;;  %s355_s21 = sshll.u32 %s713_s19, 3  ;;  %s147_s20 = scalar_lea.sflag [#allocation3], %s713_s19 }
  0x45   : > { %s150_s23 = scalar_lea.vmem [#allocation6], %s355_s21 }
  0x46   : > { %522 = dma.done.wait (%p789_p4), %s147_s20, 128  }
  0x47   : > { %524 = vsyncadd (%p789_p4), %s147_s20, 4294967168 }
  0x48   : > { %155 = sfence }
  0x49   : > { %v172_v0 = vld [vmem:[%s150_s23] sm:$0xff]  ;;  %vm176_vm0 = vcmask 1043456   ;;  %v184_v5 = vlaneseq  ;;  %s357_s17 = sld [smem:[#allocation2 + $0x1]]  ;;  %s194_s22 = sld [smem:[#allocation2]]  ;;  %vm192_vm1 = vcmask 7168   ;;  %vm216_vm2 = vcmask 23552  }
  0x4a   : > { %v174_v1 = vcombine.high %v172_v0, %v172_v0  ;;  %v177_v2 = vsel %vm176_vm0, %v172_v0, 0.0  ;;  %s358_s24 = sld [smem:[#allocation2 + $0x2]]  ;;  %v547_v36 = vmov 839922192   ;;  %s366_s15 = sshll.u32 %s585_s13, 7 }
  0x4b   : > { %v185_v6 = vand.u32 127, %v184_v5  ;;  %v188_v8 = vshrl.u32 %v184_v5, 7  ;;  %v240_v37 = vunpack.c.l.s4 %v547_v36  ;;  %s171_s25 = scalar_lea.vmem [#allocation7], %s355_s21  ;;  %s729_s29 = scalar_lea.hbm %s775_s2, %s366_s15 }
  0x4c   : > { %v178_v3 = vsel %vm176_vm0, %v174_v1, 0.0  ;;  %s264_s26 = sshll.u32 %s171_s25, 4  ;;  %s250_s30 = scalar_lea.sflag [#allocation4], %s713_s19  ;;  %s731_s26 = int_to_ptr.vmem [resolvable:$true] %s264_s26 }
  0x4d   : > { %v179_v4 = vadd.f32 %v178_v3, %v177_v2  ;;  %v186_v7 = vadd.s32 4294967295, %v185_v6  ;;  %v208_v9 = vadd.s32 1, %v185_v6  ;;  %v204_v14 = vsub.s32 %v185_v6, %v188_v8  ;;  %s473_s3 = scalar_lea.vmem %s731_s26, 128  ;;  %p790_p9 = scmp.ne.s32.totalorder %s785_s6, 0 }
  0x4e   : > { %v233_v33 = vsub.s32 3, %v188_v8  ;;  %v241_v38 = vunpack.c.0.s8 %v240_v37  ;;  %p474_p8 = scmp.ne.s32.totalorder %s731_s26, %s473_s3  ;;  %s548_s13 = smov [#allocation7]  }
  0x4f   : > { %180 = vadd.xlane.f32.xlu0 %v179_v4  ;;  %v189_v10 = vsub.s32 %v186_v7, %v188_v8  ;;  %v211_v11 = vsub.s32 %v208_v9, %v188_v8  ;;  %v199_v12 = vstv %s357_s17  ;;  %v195_v16 = vstv %s194_s22  ;;  %s477_s4 = sshll.u32 %s548_s13, 4  ;;  %s478_s4 = int_to_ptr.vmem [resolvable:$false] %s477_s4 }
  0x50   : > { %v219_v17 = vstv %s358_s24  ;;  %v244_v39 = vsub.s32 %v241_v38, %v188_v8  ;;  %p475_p11 = pnand %p474_p8, %p790_p9  ;;  %s479_s7 = scalar_lea.vmem %s478_s4, 256 }
  0x51   : > { %p480_p1 = scmp.lt.s32.totalorder %s731_s26, %s478_s4  ;;  %p481_p2 = scmp.lt.s32.totalorder %s479_s7, %s473_s3 }
  0x52   : > { %p476_p5 = pneg %p475_p11 }
  0x53   : > { %p482_p12 = por %p481_p2, %p480_p1 }
  0x55   : > { %p483_p0 = pnand %p482_p12, %p476_p5 }
  0xdc   : > { %v181_v13 = vpop.xlane.xlu0 %180 }
  0xdd   : > { %v182_v15 = vmul.f32 0.00390625, %v181_v13 }
  0xdf   : > { %v190_v18 = vrot.slane %v182_v15, %v189_v10  ;;  %v200_v19 = vmul.f32 %v199_v12, %v182_v15  ;;  %v212_v20 = vrot.slane %v182_v15, %v211_v11  ;;  %v214_v21 = vrot.slane %v182_v15, 7 }
  0xe1   : > { %v193_v22 = vsel %vm192_vm1, %v182_v15, %v190_v18  ;;  %v205_v23 = vrot.slane %v200_v19, %v204_v14  ;;  %v217_v24 = vsel %vm216_vm2, %v212_v20, %v214_v21 }
  0xe2   : > { %v196_v25 = vmul.f32 %v195_v16, %v193_v22  ;;  %v220_v26 = vmul.f32 %v219_v17, %v217_v24 }
  0xe4   : > { %v207_v27 = vadd.f32 %v205_v23, %v196_v25  ;;  %v222_v28 = vrot.slane %v220_v26, 6 }
  0xe6   : > { %v224_v29 = vadd.f32 %v222_v28, %v207_v27 }
  0xe8   : > { %v359_v30 = vmul.f32 -1.442695, %v224_v29 }
  0xea   : > { %426 = vpow2.f32 %v359_v30 }
  0xf4   : > { %v427_v31 = vpop.eup %426 }
  0xf5   : > { %v228_v32 = vadd.f32 1.0, %v427_v31 }
  0xf7   : > { %428 = vrcp.f32 %v228_v32 }
 0x101   : > { %v429_v34 = vpop.eup %428 }
 0x102   : > { %v234_v35 = vrot.slane %v429_v34, %v233_v33 }
 0x104   : > { %236 = vbcast.lane.b32.xlu0 %v234_v35, 256 }
 0x176   : > { %v237_v40 = vpop.permute.xlu0 %236 }
 0x177   : > { %v245_v41 = vrot.slane %v237_v40, %v244_v39 }
 0x179   : > { %v247_v42 = vmul.f32 %v245_v41, %v172_v0 }
 0x17b   : > { %248 = vst [vmem:[%s171_s25] sm:$0xff] %v247_v42 }
 0x17c   : > { %486 = shalt.err (!%p483_p0)
}
 0x17d   : > { %s487_s8 = scalar_lea.hbm %s729_s29, 128  ;;  %s491_s21 = scalar_lea.hbm %s775_s2, 256 }
 0x17e   : > { %p488_p3 = scmp.ne.s32.totalorder %s729_s29, %s487_s8  ;;  %p492_p6 = scmp.lt.u32.totalorder %s729_s29, %s775_s2 }
 0x17f   : > { %p493_p13 = scmp.lt.u32.totalorder %s491_s21, %s487_s8  ;;  %p495_p8 = scmp.lt.u32.totalorder %s487_s8, %s729_s29 }
 0x180   : > { %p489_p7 = pnand %p488_p3, %p790_p9 }
 0x181   : > { %p494_p4 = por %p493_p13, %p492_p6 }
 0x182   : > { %p490_p10 = pneg %p489_p7 }
 0x183   : > { %p496_p11 = por %p495_p8, %p494_p4 }
 0x185   : > { %p497_p5 = pnand %p496_p11, %p490_p10 }
 0x187   : > { %500 = shalt.err (!%p497_p5)
}
 0x188   : > { %373 = dma.vmem_to_hbm [thread:$0]  (%p790_p9), %s731_s26, 128, %s729_s29, %s250_s30  }
 0x189 PF: > { %s276_s17 = sand.u32 1, %s531_s9   ;;  %p791_p1 = scmp.ne.s32.totalorder %s780_s16, 0 }
 0x18a   : > { %p792_p2 = scmp.ge.s32.totalorder %s543_s12, 2  ;;  %s277_s22 = scalar_lea.sflag [#allocation4], %s276_s17 }
 0x18c   : > { %p384_p12 = pnand %p792_p2, %p791_p1 }
 0x18e   : > { %526 = dma.done.wait (!%p384_p12), %s277_s22, 128  }
 0x18f   : > { %528 = vsyncadd (!%p384_p12), %s277_s22, 4294967168  ;;  %p16_p0 = scmp.ge.s32.totalorder %s610_s18, 4   ;;  %s793_s9 = smov %s535_s10 }
 0x190   : > { %s794_s10 = smov %s539_s11  ;;  %s795_s11 = smov %s650_s5 }
 0x191   : > { %s796_s12 = smov %s610_s18  ;;  %18 = sbr.rel (!%p16_p0) target bundleno = 6 (0x6), region = 78 }
 0x198   :  { %282 = vsyncpa [#allocation3], 1 }
 0x199   :  { %284 = vsyncpa [#allocation3 + $0x1], 1 }
 0x19a   :  { %285 = vsyncpa [#allocation4], 1 }
 0x19b   :  { %287 = vsyncpa [#allocation4 + $0x1], 1 }
 0x19c   :  { %288 = vsyncpa [#allocation5], 1 }
 0x19d   :  { %290 = vsyncpa [#allocation5 + $0x1], 1 }

</bundles_post_ra>
